<compile_context>
chip_gen: v5e
topology: v5e:2x2
jax: 0.10.0
libtpu: 0.0.40
codegen_flags: <defaults>
</compile_context>

<pallas_src>
import functools

import jax
import jax.numpy as jnp
from jax.experimental import pallas as pl
from jax.experimental.pallas import tpu as pltpu

# ----------------------------- hyperparameters ------------------------------
HPARAM = {"N_LAYERS": 2, "AE_F_ENCODING": 2, "DROPOUT_P": 0.1}
IN_FEATURES = 32
BATCH = 32          # small demo batch; kernel is gridded so larger batches just add tiles
TM = 8              # rows per grid step for the demo (one f32 sublane tile)

SELU_ALPHA = 1.6732632423543772
SELU_SCALE = 1.0507009873554805


def _selu(x):
    # torch.nn.SELU: scale * (max(0,x) + min(0, alpha*(exp(x)-1)))
    return SELU_SCALE * jnp.where(x > 0, x, SELU_ALPHA * (jnp.exp(x) - 1.0))


def _mix_u32(x):
    # Portable 32-bit integer hash (lowrey/prospector finalizer). Pure VPU ops,
    # so it lowers on TPU and in interpret mode alike.
    x = x ^ (x >> 16)
    x = x * jnp.uint32(0x7FEB352D)
    x = x ^ (x >> 15)
    x = x * jnp.uint32(0x846CA68B)
    x = x ^ (x >> 16)
    return x


# ------------------------------- Pallas kernel ------------------------------
def ae_encoder_kernel(n_layers, keep_prob, w_pad, lat, tm,
                      seed_ref, x_ref, wpack_ref, bpack_ref, z_ref):
    """One batch tile per grid step.  Weights stay resident across the grid."""
    use_dropout = keep_prob < 1.0

    w_all = wpack_ref[...]        # (n_layers*w_pad, w_pad), zero-padded
    b_all = bpack_ref[...]        # (n_layers, w_pad),       zero-padded
    h = x_ref[...]                # (tm, w_pad)

    if use_dropout:
        inv_keep = jnp.float32(1.0 / keep_prob)
        # keep iff hash(u32) < keep * 2^32  (fold 1/keep into the select)
        thr = jnp.uint32(min(int(keep_prob * 4294967296.0), 4294967295))
        # Global element index -> deterministic, tile-invariant RNG stream.
        row0 = (pl.program_id(0) * tm).astype(jnp.int32)
        rows = jax.lax.broadcasted_iota(jnp.int32, (tm, w_pad), 0) + row0
        cols = jax.lax.broadcasted_iota(jnp.int32, (tm, w_pad), 1)
        elem = (rows * w_pad + cols).astype(jnp.uint32)
        base = _mix_u32(seed_ref[0].astype(jnp.uint32) * jnp.uint32(0x9E3779B9))

    # encoder: [Linear -> SELU -> Dropout] * n_layers (unrolled at trace time).
    # Padded columns stay exactly zero through SELU/dropout/matmul, so every
    # layer runs on a uniform (tm, w_pad) tile with a single MXU dot.
    for i in range(n_layers):
        w = w_all[i * w_pad:(i + 1) * w_pad, :]
        b = b_all[i:i + 1, :]
        h = jnp.dot(h, w, preferred_element_type=jnp.float32) + b
        h = _selu(h)
        if use_dropout:
            salt = base + jnp.uint32(((i + 1) * 0x85EBCA6B) & 0xFFFFFFFF)
            bits = _mix_u32(elem ^ salt)
            h = h * jnp.where(bits < thr, inv_keep, jnp.float32(0.0))

    z_ref[...] = h[:, :lat]


# ------------------------------ python wrapper -------------------------------
def make_packed_params(key, in_features, hparam):
    """nn.Linear-style init (U(-1/sqrt(fan_in), +)), packed into two padded slabs.

    wpack[(i*W):(i+1)*W, :]  holds layer i's weight (in_i, out_i), zero-padded.
    bpack[i, :]              holds layer i's bias   (out_i,),      zero-padded.
    Weights are stored as [in, out] so the kernel computes x @ W + b.
    """
    n_layers = hparam["N_LAYERS"]
    f = hparam["AE_F_ENCODING"]
    w_pad = in_features
    dims, raw, w_slabs, b_slabs = [], [], [], []
    in_ = in_features
    for i in range(n_layers):
        in_ = in_ if i == 0 else int(in_ / f)
        enc_ = int(in_ / f)
        dims.append((in_, enc_))
        key, kw, kb = jax.random.split(key, 3)
        bound = 1.0 / (float(in_) ** 0.5)
        w = jax.random.uniform(kw, (in_, enc_), jnp.float32, -bound, bound)
        b = jax.random.uniform(kb, (enc_,), jnp.float32, -bound, bound)
        raw.append((w, b))
        w_slabs.append(jnp.zeros((w_pad, w_pad), jnp.float32).at[:in_, :enc_].set(w))
        b_slabs.append(jnp.zeros((w_pad,), jnp.float32).at[:enc_].set(b))
    wpack = jnp.concatenate(w_slabs, axis=0)   # (n_layers*w_pad, w_pad)
    bpack = jnp.stack(b_slabs, axis=0)         # (n_layers, w_pad)
    lat = dims[-1][1]
    return wpack, bpack, raw, dims, lat


def ae_encoder_forward(x, wpack, bpack, lat, hparam, seed, *, tm=128):
    n_layers = hparam["N_LAYERS"]
    keep = 1.0 - hparam["DROPOUT_P"]
    batch, w_pad = x.shape
    tm = min(tm, batch)
    assert batch % tm == 0 and tm % 8 == 0

    kernel = functools.partial(ae_encoder_kernel, n_layers, keep, w_pad, lat, tm)
    seed_arr = jnp.asarray([seed], jnp.int32)

    return pl.pallas_call(
        kernel,
        out_shape=jax.ShapeDtypeStruct((batch, lat), jnp.float32),
        grid_spec=pltpu.PrefetchScalarGridSpec(
            num_scalar_prefetch=1,                       # seed -> SMEM
            grid=(batch // tm,),
            in_specs=[
                pl.BlockSpec((tm, w_pad), lambda i, s: (i, 0)),                # x tile
                pl.BlockSpec((n_layers * w_pad, w_pad), lambda i, s: (0, 0)),  # weights (resident)
                pl.BlockSpec((n_layers, w_pad), lambda i, s: (0, 0)),          # biases  (resident)
            ],
            out_specs=pl.BlockSpec((tm, lat), lambda i, s: (i, 0)),
        ),
        compiler_params=pltpu.CompilerParams(
            dimension_semantics=("parallel",)),          # megacore-split batch
    )(seed_arr, x, wpack, bpack)


def reference_forward(x, raw_params):
    """Pure-JAX reference (no dropout) for correctness checking."""
    h = x
    for w, b in raw_params:
        h = _selu(jnp.dot(h, w, precision=jax.lax.Precision.HIGHEST) + b)
    return h


# ----------------------------------- main ------------------------------------
if __name__ == "__main__":
    key = jax.random.PRNGKey(0)
    key_x, key_p = jax.random.split(key, 2)

    x = jax.random.normal(key_x, (BATCH, IN_FEATURES), jnp.float32)
    wpack, bpack, raw, dims, lat = make_packed_params(key_p, IN_FEATURES, HPARAM)

    # 1) correctness: dropout disabled -> must match the pure-JAX MLP reference
    hp_eval = dict(HPARAM, DROPOUT_P=0.0)
    z_eval = jax.block_until_ready(
        ae_encoder_forward(x, wpack, bpack, lat, hp_eval, seed=0, tm=TM))
    z_ref = reference_forward(x, raw)
    assert z_eval.shape == (BATCH, lat)
    assert jnp.allclose(z_eval, z_ref, atol=1e-3, rtol=1e-3), "mismatch vs reference"

    # 2) training-mode forward with in-kernel dropout (p = DROPOUT_P)
    z = jax.block_until_ready(
        ae_encoder_forward(x, wpack, bpack, lat, HPARAM, seed=1234, tm=TM))
    assert z.shape == (BATCH, lat)
    assert jnp.isfinite(z).all()

    print("KERNEL_OK")
</pallas_src>

<mosaic_0001>
module attributes {stable_mosaic.version = 11 : i64} {
  func.func @ae_encoder_kernel(%arg0: i32, %arg1: memref<1xi32, #tpu.memory_space<smem>>, %arg2: memref<8x32xf32, #tpu.memory_space<vmem>>, %arg3: memref<64x32xf32, #tpu.memory_space<vmem>>, %arg4: memref<2x32xf32, #tpu.memory_space<vmem>>, %arg5: memref<8x8xf32, #tpu.memory_space<vmem>>) attributes {dimension_semantics = [#tpu.dimension_semantics<parallel>], iteration_bounds = array<i64: 4>, scalar_prefetch = 1 : i64, scratch_operands = 0 : i64, tpu.core_type = #tpu.core_type<tc>, window_params = [{transform_indices = @transform_0, window_bounds = array<i64: 8, 32>}, {pipeline_mode = #tpu.pipeline_mode<synchronous>, transform_indices = @transform_1, window_bounds = array<i64: 64, 32>}, {pipeline_mode = #tpu.pipeline_mode<synchronous>, transform_indices = @transform_2, window_bounds = array<i64: 2, 32>}, {transform_indices = @transform_3, window_bounds = array<i64: 8, 8>}]} {
    %c0 = arith.constant 0 : index
    %c0_0 = arith.constant 0 : index
    %0 = vector.load %arg3[%c0, %c0_0] : memref<64x32xf32, #tpu.memory_space<vmem>>, vector<64x32xf32>
    %c0_1 = arith.constant 0 : index
    %c0_2 = arith.constant 0 : index
    %1 = vector.load %arg4[%c0_1, %c0_2] : memref<2x32xf32, #tpu.memory_space<vmem>>, vector<2x32xf32>
    %c0_3 = arith.constant 0 : index
    %c0_4 = arith.constant 0 : index
    %2 = vector.load %arg2[%c0_3, %c0_4] : memref<8x32xf32, #tpu.memory_space<vmem>>, vector<8x32xf32>
    %3 = vector.extract_strided_slice %0 {offsets = [0, 0], sizes = [32, 32], strides = [1, 1]} : vector<64x32xf32> to vector<32x32xf32>
    %4 = vector.extract_strided_slice %1 {offsets = [0, 0], sizes = [1, 32], strides = [1, 1]} : vector<2x32xf32> to vector<1x32xf32>
    %cst = arith.constant dense<0.000000e+00> : vector<8x32xf32>
    %5 = tpu.matmul %2, %3, %cst {dimension_numbers = #tpu.dot_dimension_numbers<[1], [0], [0], [1], [0, 0, 1, 1], [], []>} : vector<8x32xf32>, vector<32x32xf32>, vector<8x32xf32> -> vector<8x32xf32>
    %6 = vector.broadcast %4 : vector<1x32xf32> to vector<8x32xf32>
    %7 = arith.addf %5, %6 : vector<8x32xf32>
    %cst_5 = arith.constant 0.000000e+00 : f32
    %8 = vector.broadcast %cst_5 : f32 to vector<8x32xf32>
    %9 = arith.cmpf ogt, %7, %8 : vector<8x32xf32>
    %10 = math.exp %7 : vector<8x32xf32>
    %cst_6 = arith.constant 1.000000e+00 : f32
    %11 = vector.broadcast %cst_6 : f32 to vector<8x32xf32>
    %12 = arith.subf %10, %11 : vector<8x32xf32>
    %cst_7 = arith.constant 1.67326319 : f32
    %13 = vector.broadcast %cst_7 : f32 to vector<8x32xf32>
    %14 = arith.mulf %13, %12 : vector<8x32xf32>
    %15 = arith.select %9, %7, %14 : vector<8x32xi1>, vector<8x32xf32>
    %cst_8 = arith.constant 1.05070102 : f32
    %16 = vector.broadcast %cst_8 : f32 to vector<8x32xf32>
    %17 = arith.mulf %16, %15 : vector<8x32xf32>
    %18 = vector.extract_strided_slice %0 {offsets = [32, 0], sizes = [32, 32], strides = [1, 1]} : vector<64x32xf32> to vector<32x32xf32>
    %19 = vector.extract_strided_slice %1 {offsets = [1, 0], sizes = [1, 32], strides = [1, 1]} : vector<2x32xf32> to vector<1x32xf32>
    %cst_9 = arith.constant dense<0.000000e+00> : vector<8x32xf32>
    %20 = tpu.matmul %17, %18, %cst_9 {dimension_numbers = #tpu.dot_dimension_numbers<[1], [0], [0], [1], [0, 0, 1, 1], [], []>} : vector<8x32xf32>, vector<32x32xf32>, vector<8x32xf32> -> vector<8x32xf32>
    %21 = vector.broadcast %19 : vector<1x32xf32> to vector<8x32xf32>
    %22 = arith.addf %20, %21 : vector<8x32xf32>
    %cst_10 = arith.constant 0.000000e+00 : f32
    %23 = vector.broadcast %cst_10 : f32 to vector<8x32xf32>
    %24 = arith.cmpf ogt, %22, %23 : vector<8x32xf32>
    %25 = math.exp %22 : vector<8x32xf32>
    %cst_11 = arith.constant 1.000000e+00 : f32
    %26 = vector.broadcast %cst_11 : f32 to vector<8x32xf32>
    %27 = arith.subf %25, %26 : vector<8x32xf32>
    %cst_12 = arith.constant 1.67326319 : f32
    %28 = vector.broadcast %cst_12 : f32 to vector<8x32xf32>
    %29 = arith.mulf %28, %27 : vector<8x32xf32>
    %30 = arith.select %24, %22, %29 : vector<8x32xi1>, vector<8x32xf32>
    %cst_13 = arith.constant 1.05070102 : f32
    %31 = vector.broadcast %cst_13 : f32 to vector<8x32xf32>
    %32 = arith.mulf %31, %30 : vector<8x32xf32>
    %33 = vector.extract_strided_slice %32 {offsets = [0, 0], sizes = [8, 8], strides = [1, 1]} : vector<8x32xf32> to vector<8x8xf32>
    %c0_14 = arith.constant 0 : index
    %c0_15 = arith.constant 0 : index
    %34 = vector.load %arg5[%c0_14, %c0_15] : memref<8x8xf32, #tpu.memory_space<vmem>>, vector<8x8xf32>
    tpu.vector_store %arg5[%c0_14, %c0_15], %33 {strides = array<i32>} : memref<8x8xf32, #tpu.memory_space<vmem>>, vector<8x8xf32>,
    return
  }
  func.func @transform_0(%arg0: i32, %arg1: memref<1xi32, #tpu.memory_space<smem>>) -> (i32, i32) {
    %c0_i32 = arith.constant 0 : i32
    %c0_i32_0 = arith.constant 0 : i32
    return %arg0, %c0_i32 : i32, i32
  }
  func.func @transform_1(%arg0: i32, %arg1: memref<1xi32, #tpu.memory_space<smem>>) -> (i32, i32) {
    %c0_i32 = arith.constant 0 : i32
    %c0_i32_0 = arith.constant 0 : i32
    %c0_i32_1 = arith.constant 0 : i32
    return %c0_i32, %c0_i32_0 : i32, i32
  }
  func.func @transform_2(%arg0: i32, %arg1: memref<1xi32, #tpu.memory_space<smem>>) -> (i32, i32) {
    %c0_i32 = arith.constant 0 : i32
    %c0_i32_0 = arith.constant 0 : i32
    %c0_i32_1 = arith.constant 0 : i32
    return %c0_i32, %c0_i32_0 : i32, i32
  }
  func.func @transform_3(%arg0: i32, %arg1: memref<1xi32, #tpu.memory_space<smem>>) -> (i32, i32) {
    %c0_i32 = arith.constant 0 : i32
    %c0_i32_0 = arith.constant 0 : i32
    return %arg0, %c0_i32 : i32, i32
  }
}

</mosaic_0001>

<bundles_post_ra>
// kernel: tpu_custom_call.1
= control target key start
LH: loop header
LB: loop body
LE: loop exit
PB: predicated region body
PF: predicated region fallthrough
CT: control target
= control target key end

     0   :  { %s354_s15 = smov 0   ;;  %s407_s0 = inlined_call_operand.<no memory space> [shape: s32[1], index: 0, kind: input, shape index: {}]   ;;  %s408_s1 = inlined_call_operand.vmem [shape: f32[32,32], index: 1, kind: input, shape index: {}]   ;;  %s409_s2 = inlined_call_operand.vmem [shape: f32[64,32], index: 2, kind: input, shape index: {}]   ;;  %s410_s3 = inlined_call_operand.vmem [shape: f32[2,32], index: 3, kind: input, shape index: {}]   ;;  %s411_s4 = inlined_call_operand.vmem [shape: f32[32,8], index: 4, kind: output, shape index: {}]  }
   0x1 LB: > { %s296_s0 = sadd.s32 4294967295, %s327_s15   ;;  %p300_p0 = scmp.ge.s32.totalorder %s327_s15, 1  ;;  %s327_s15 = sphi %s354_s15, %s15_s15  }
   0x2   : > { %p138_p1 = scmp.lt.s32.totalorder %s327_s15, 5 }
   0x4   : > { %p139_p2 = pnand %p300_p0, %p138_p1 }
   0x5   : > { %p160_p3 = scmp.lt.s32.totalorder (!%p139_p2), %s296_s0, 3 }
   0x6   : > { %142 = sbr.rel (%p139_p2) target bundleno = 308 (0x134), region = 32 }
   0xb   : > { %v171_v0 = vld [vmem:[%s409_s2 + $0x18] sm:$0xff]  ;;  %v170_v1 = vld [vmem:[%s409_s2 + $0x10] sm:$0xff]  ;;  %v169_v2 = vld [vmem:[%s409_s2 + $0x8] sm:$0xff]  ;;  %s413_s0 = smov (!%p160_p3, %s296_s0), 3  ;;  %vm179_vm0 = vcmask 261120   ;;  %vm241_vm3 = vcmask 64512  }
   0xc   : > { %195 = vmatpush.msra.mxu0 %v171_v0  ;;  %v168_v3 = vld [vmem:[%s409_s2] sm:$0xff]  ;;  %s301_s24 = sshll.u32 %s413_s0, 3  ;;  %v175_v5 = vld [vmem:[%s409_s2 + $0x38] sm:$0xff]  ;;  %v174_v6 = vld [vmem:[%s409_s2 + $0x30] sm:$0xff] }
   0xd   : > { %s163_s27 = scalar_lea.vmem %s408_s1, %s301_s24  ;;  %226 = vmatpush.msra.mxu1 %v175_v5  ;;  %v173_v7 = vld [vmem:[%s409_s2 + $0x28] sm:$0xff]  ;;  %v172_v8 = vld [vmem:[%s409_s2 + $0x20] sm:$0xff]  ;;  %s167_s14 = scalar_lea.vmem %s411_s4, %s301_s24 }
   0xe   : > { %196 = vmatpush.msra.mxu0 %v170_v1  ;;  %v177_v4 = vld [vmem:[%s163_s27] sm:$0xff] }
   0xf   : > { %227 = vmatpush.msra.mxu1 %v174_v6  ;;  %v176_v9 = vld [vmem:[%s410_s3] sm:$0x3] }
  0x10   : > { %197 = vmatpush.msra.mxu0 %v169_v2  ;;  %v178_v10 = vperm.slane %v176_v9, 0  ;;  %v210_v19 = vperm.slane %v176_v9, 1 }
  0x11   : > { %228 = vmatpush.msra.mxu1 %v173_v7 }
  0x12   : > { %198 = vmatpush.msra.mxu0 %v168_v3 }
  0x13   : > { %303 = vmatmul.msk.f32.vlgmr.msra.gmra.mxu0 %vm179_vm0, %v177_v4  ;;  %229 = vmatpush.msra.mxu1 %v172_v8 }
  0x90   : > { %v200_v11 = vpop.f32.mrf.mxu0 }
  0x91   : > { %v201_v12 = vadd.f32 %v200_v11, %v178_v10 }
  0x93   : > { %v204_v13 = vmul.f32 1.442695, %v201_v12  ;;  %vm203_vm1 = vcmp.gt.f32.partialorder %v201_v12, 0.0 }
  0x95   : > { %317 = vpow2.f32 %v204_v13 }
  0x9b   : > { %v318_v14 = vpop.eup %317 }
  0x9c   : > { %v304_v15 = vadd.f32 -1.0, %v318_v14 }
  0x9e   : > { %v207_v16 = vmul.f32 1.6732632, %v304_v15 }
  0xa0   : > { %v208_v17 = vsel %vm203_vm1, %v201_v12, %v207_v16 }
  0xa1   : > { %v209_v18 = vmul.f32 1.050701, %v208_v17 }
  0xa3   : > { %305 = vmatmul.msk.f32.vlgmr.msra.gmra.mxu1 %vm179_vm0, %v209_v18 }
 0x120   : > { %v231_v20 = vpop.f32.mrf.mxu1 }
 0x121   : > { %v232_v21 = vadd.f32 %v231_v20, %v210_v19 }
 0x123   : > { %v235_v22 = vmul.f32 1.442695, %v232_v21  ;;  %vm234_vm2 = vcmp.gt.f32.partialorder %v232_v21, 0.0 }
 0x125   : > { %319 = vpow2.f32 %v235_v22 }
 0x12b   : > { %v320_v23 = vpop.eup %319 }
 0x12c   : > { %v306_v24 = vadd.f32 -1.0, %v320_v23 }
 0x12e   : > { %v238_v25 = vmul.f32 1.6732632, %v306_v24 }
 0x130   : > { %v239_v26 = vsel %vm234_vm2, %v232_v21, %v238_v25 }
 0x131   : > { %v240_v27 = vmul.f32 1.050701, %v239_v26 }
 0x133   : > { %242 = vst.msk [vmem:[%s167_s14] sm:$0xff] %vm241_vm3, %v240_v27 }
 0x134 PF: > { %s15_s15 = sadd.s32 1, %s327_s15  }
 0x135   : > { %p12_p4 = scmp.ge.s32.totalorder %s15_s15, 6  }
 0x137   :  { %14 = sbr.rel (!%p12_p4) target bundleno = 1 (0x1), region = 62 }

</bundles_post_ra>
